<compile_context>
chip_gen: v5e
topology: v5e:2x2
jax: 0.10.0
libtpu: 0.0.40
codegen_flags: <defaults>
</compile_context>

<pallas_src>
import functools

import jax
import jax.numpy as jnp
from jax.experimental import pallas as pl
from jax.experimental.pallas import tpu as pltpu

# ---- fused / padded parameter layout (rows x 128 lanes, 8-aligned offsets) ---
IN_FEATURES = 20  # module input width
IN_PAD = 32       # w0 section padded to 32 rows (keeps later offsets 8-aligned)
H_PAD = 128       # hidden width padded to one full lane vector
STRIP = 128       # batch rows packed into one lane-dense output row

OFF_W0 = 0                    # rows [0, 32)   : w0 (only first 20 rows used)
OFF_B0 = OFF_W0 + IN_PAD      # rows [32, 40)  : row 32 = b0
OFF_W1 = OFF_B0 + 8           # rows [40, 168) : w1 padded to (H_PAD, H_PAD)
OFF_B1 = OFF_W1 + H_PAD       # rows [168,176) : row 168 = b1
OFF_WD = OFF_B1 + 8           # rows [176,304) : (w2[:,1]-w2[:,0]) on all lanes
OFF_BD = OFF_WD + H_PAD       # rows [304,312) : row 304 = b2[1]-b2[0] on all lanes
P_ROWS = OFF_BD + 8           # 312 total rows


def mlp_kernel(x_ref, p_ref, out_ref, *, spb, in_features):
    """x_ref: (tb, in_features) f32, p_ref: (P_ROWS, 128) f32,
    out_ref: (spb, 128) f32 -- packed P(class=1) per 128-row strip."""
    x = x_ref[...]                                              # (tb, 20)

    # dense0 + ReLU (contract over exactly the 20 valid weight rows)
    w0 = p_ref[OFF_W0:OFF_W0 + in_features, :]                  # (20, H_PAD)
    b0 = p_ref[OFF_B0:OFF_B0 + 1, :]                            # (1, H_PAD)
    h0 = jnp.maximum(
        jnp.dot(x, w0, preferred_element_type=jnp.float32) + b0, 0.0)

    # dropout -> identity at inference
    # TODO(synk): training-mode dropout via pltpu.prng_seed / prng_random_bits.

    # dense1 + ReLU
    w1 = p_ref[OFF_W1:OFF_W1 + H_PAD, :]                        # (H_PAD, H_PAD)
    b1 = p_ref[OFF_B1:OFF_B1 + 1, :]
    h1 = jnp.maximum(
        jnp.dot(h0, w1, preferred_element_type=jnp.float32) + b1, 0.0)

    # output layer: d = logit1 - logit0, replicated across all 128 lanes
    wd = p_ref[OFF_WD:OFF_WD + H_PAD, :]                        # (H_PAD, H_PAD)
    bd = p_ref[OFF_BD:OFF_BD + 1, :]
    d = jnp.dot(h1, wd, preferred_element_type=jnp.float32) + bd  # (tb, 128)

    # Pack: per 128-row strip, transpose (XLU slot) so the 128 batch rows land
    # in lanes of a single row, then apply the 2-class softmax as a tanh-based
    # sigmoid AFTER packing (one EUP push per 128 rows).
    for s in range(spb):
        strip = d[s * STRIP:(s + 1) * STRIP, :]                 # (128, 128)
        drow = strip.T[0:1, :]                                  # (1, 128) packed d
        out_ref[s:s + 1, :] = 0.5 * (jnp.tanh(0.5 * drow) + 1.0)


def _cdiv(a, b):
    return -(-a // b)


def pack_params(params, num_neurons=10, in_features=20):
    """Fuse + zero-pad all weights/biases into one (312, 128) f32 slab."""
    H = num_neurons
    assert in_features <= IN_PAD and H <= H_PAD
    w0, b0 = params["w0"], params["b0"]          # (20,H), (H,)
    w1, b1 = params["w1"], params["b1"]          # (H,H),  (H,)
    w2, b2 = params["w2"], params["b2"]          # (H,2),  (2,)

    P = jnp.zeros((P_ROWS, H_PAD), dtype=jnp.float32)
    P = P.at[OFF_W0:OFF_W0 + in_features, :H].set(w0)
    P = P.at[OFF_B0, :H].set(b0)
    P = P.at[OFF_W1:OFF_W1 + H, :H].set(w1)
    P = P.at[OFF_B1, :H].set(b1)
    wd = w2[:, 1] - w2[:, 0]                     # (H,)
    bd = b2[1] - b2[0]                           # scalar
    P = P.at[OFF_WD:OFF_WD + H, :].set(jnp.broadcast_to(wd[:, None], (H, H_PAD)))
    P = P.at[OFF_BD, :].set(bd)
    return P


def my_neural_net_forward(x, packed_params, *, tb_target=2048):
    """x: (B, 20) float32.  packed_params: output of pack_params().
    Returns softmax probabilities of shape (B, 2)."""
    B, in_features = x.shape
    assert in_features <= IN_PAD

    # --- choose batch tiling ---------------------------------------------
    # tb is always a multiple of 128 (strip packing + (8,128) constraint).
    # Force >=2 grid steps whenever there are >=2 strips so both v7x
    # TensorCores get work; cap strips-per-block near tb_target//128.
    tb_target = max(int(tb_target), STRIP)
    n_strips = _cdiv(B, STRIP)
    spb_target = max(tb_target // STRIP, 1)
    n_blocks = max(_cdiv(n_strips, spb_target), 2 if n_strips >= 2 else 1)
    spb = _cdiv(n_strips, n_blocks)              # strips per block
    n_blocks = _cdiv(n_strips, spb)
    tb = spb * STRIP
    b_pad = n_blocks * tb

    # Batch-only padding (no lane padding round trip); skipped when aligned.
    x_pad = x.astype(jnp.float32)
    if b_pad != B:
        x_pad = jnp.pad(x_pad, ((0, b_pad - B), (0, 0)))

    kernel = functools.partial(mlp_kernel, spb=spb, in_features=in_features)

    out = pl.pallas_call(
        kernel,
        out_shape=jax.ShapeDtypeStruct((n_blocks, spb, H_PAD), jnp.float32),
        grid_spec=pltpu.PrefetchScalarGridSpec(
            num_scalar_prefetch=0,
            grid=(n_blocks,),
            in_specs=[
                # batch-tiled x; last dim 20 == full array dim (legal block)
                pl.BlockSpec((tb, in_features), lambda i: (i, 0)),
                # fused params, resident (constant index_map -> single DMA)
                pl.BlockSpec((P_ROWS, H_PAD), lambda i: (0, 0)),
            ],
            # packed output: one (spb, 128) strip-block per grid step
            out_specs=pl.BlockSpec((None, spb, H_PAD), lambda i: (i, 0, 0)),
        ),
        compiler_params=pltpu.CompilerParams(
            dimension_semantics=("parallel",),
            vmem_limit_bytes=48 * 1024 * 1024,
        ),
    )(x_pad, packed_params)

    # Padded rows hold finite garbage; slice them away before assembling (B,2).
    p1 = out.reshape(-1)[:B]
    return jnp.stack([1.0 - p1, p1], axis=-1)


def init_params(key, num_neurons=10, in_features=20, out_features=2):
    """PyTorch nn.Linear default init: U(-1/sqrt(fan_in), 1/sqrt(fan_in)).
    Weights stored as (in, out) so forward is y = x @ W + b."""
    ks = jax.random.split(key, 6)

    def uniform(k, shape, fan_in):
        bound = 1.0 / jnp.sqrt(jnp.float32(fan_in))
        return jax.random.uniform(k, shape, jnp.float32, -bound, bound)

    return {
        "w0": uniform(ks[0], (in_features, num_neurons), in_features),
        "b0": uniform(ks[1], (num_neurons,), in_features),
        "w1": uniform(ks[2], (num_neurons, num_neurons), num_neurons),
        "b1": uniform(ks[3], (num_neurons,), num_neurons),
        "w2": uniform(ks[4], (num_neurons, out_features), num_neurons),
        "b2": uniform(ks[5], (out_features,), num_neurons),
    }


def reference_forward(x, params):
    h0 = jnp.maximum(x @ params["w0"] + params["b0"], 0.0)
    h1 = jnp.maximum(h0 @ params["w1"] + params["b1"], 0.0)
    logits = h1 @ params["w2"] + params["b2"]
    return jax.nn.softmax(logits, axis=-1)


if __name__ == "__main__":
    key = jax.random.PRNGKey(0)
    k_p, k_a, k_b, k_c = jax.random.split(key, 4)

    H = 10
    params = init_params(k_p, num_neurons=H, in_features=IN_FEATURES, out_features=2)
    packed = pack_params(params, num_neurons=H, in_features=IN_FEATURES)

    # small demo batch, a non-multiple batch (multi-block), and a multi-strip batch
    for kx, B in ((k_a, 8), (k_b, 300), (k_c, 1000)):
        x = jax.random.normal(kx, (B, IN_FEATURES), dtype=jnp.float32)
        y = jax.block_until_ready(my_neural_net_forward(x, packed))
        y_ref = reference_forward(x, params)
        assert y.shape == (B, 2)
        assert jnp.allclose(jnp.sum(y, axis=-1), 1.0, atol=1e-5)
        assert jnp.allclose(y, y_ref, atol=1e-3, rtol=1e-3)

    print("KERNEL_OK")
</pallas_src>

<mosaic_0001>
module attributes {stable_mosaic.version = 11 : i64} {
  func.func @mlp_kernel(%arg0: i32, %arg1: memref<128x20xf32, #tpu.memory_space<vmem>>, %arg2: memref<312x128xf32, #tpu.memory_space<vmem>>, %arg3: memref<1x1x128xf32, #tpu.memory_space<vmem>>) attributes {dimension_semantics = [#tpu.dimension_semantics<parallel>], iteration_bounds = array<i64: 1>, scalar_prefetch = 0 : i64, scratch_operands = 0 : i64, tpu.core_type = #tpu.core_type<tc>, window_params = [{transform_indices = @transform_0, window_bounds = array<i64: 128, 20>}, {pipeline_mode = #tpu.pipeline_mode<synchronous>, transform_indices = @transform_1, window_bounds = array<i64: 312, 128>}, {transform_indices = @transform_2, window_bounds = array<i64: 1, 1, 128>}]} {
    %c0 = arith.constant 0 : index
    %c0_0 = arith.constant 0 : index
    %0 = vector.load %arg1[%c0, %c0_0] : memref<128x20xf32, #tpu.memory_space<vmem>>, vector<128x20xf32>
    %c0_1 = arith.constant 0 : index
    %c0_2 = arith.constant 0 : index
    %1 = vector.load %arg2[%c0_1, %c0_2] : memref<312x128xf32, #tpu.memory_space<vmem>>, vector<20x128xf32>
    %c32 = arith.constant 32 : index
    %c0_3 = arith.constant 0 : index
    %2 = vector.load %arg2[%c32, %c0_3] : memref<312x128xf32, #tpu.memory_space<vmem>>, vector<1x128xf32>
    %cst = arith.constant dense<0.000000e+00> : vector<128x128xf32>
    %3 = tpu.matmul %0, %1, %cst {dimension_numbers = #tpu.dot_dimension_numbers<[1], [0], [0], [1], [0, 0, 1, 1], [], []>} : vector<128x20xf32>, vector<20x128xf32>, vector<128x128xf32> -> vector<128x128xf32>
    %4 = vector.broadcast %2 : vector<1x128xf32> to vector<128x128xf32>
    %5 = arith.addf %3, %4 : vector<128x128xf32>
    %cst_4 = arith.constant 0.000000e+00 : f32
    %6 = vector.broadcast %cst_4 : f32 to vector<128x128xf32>
    %7 = arith.maximumf %5, %6 : vector<128x128xf32>
    %c40 = arith.constant 40 : index
    %c0_5 = arith.constant 0 : index
    %8 = vector.load %arg2[%c40, %c0_5] : memref<312x128xf32, #tpu.memory_space<vmem>>, vector<128x128xf32>
    %c168 = arith.constant 168 : index
    %c0_6 = arith.constant 0 : index
    %9 = vector.load %arg2[%c168, %c0_6] : memref<312x128xf32, #tpu.memory_space<vmem>>, vector<1x128xf32>
    %cst_7 = arith.constant dense<0.000000e+00> : vector<128x128xf32>
    %10 = tpu.matmul %7, %8, %cst_7 {dimension_numbers = #tpu.dot_dimension_numbers<[1], [0], [0], [1], [0, 0, 1, 1], [], []>} : vector<128x128xf32>, vector<128x128xf32>, vector<128x128xf32> -> vector<128x128xf32>
    %11 = vector.broadcast %9 : vector<1x128xf32> to vector<128x128xf32>
    %12 = arith.addf %10, %11 : vector<128x128xf32>
    %cst_8 = arith.constant 0.000000e+00 : f32
    %13 = vector.broadcast %cst_8 : f32 to vector<128x128xf32>
    %14 = arith.maximumf %12, %13 : vector<128x128xf32>
    %c176 = arith.constant 176 : index
    %c0_9 = arith.constant 0 : index
    %15 = vector.load %arg2[%c176, %c0_9] : memref<312x128xf32, #tpu.memory_space<vmem>>, vector<128x128xf32>
    %c304 = arith.constant 304 : index
    %c0_10 = arith.constant 0 : index
    %16 = vector.load %arg2[%c304, %c0_10] : memref<312x128xf32, #tpu.memory_space<vmem>>, vector<1x128xf32>
    %cst_11 = arith.constant dense<0.000000e+00> : vector<128x128xf32>
    %17 = tpu.matmul %14, %15, %cst_11 {dimension_numbers = #tpu.dot_dimension_numbers<[1], [0], [0], [1], [0, 0, 1, 1], [], []>} : vector<128x128xf32>, vector<128x128xf32>, vector<128x128xf32> -> vector<128x128xf32>
    %18 = vector.broadcast %16 : vector<1x128xf32> to vector<128x128xf32>
    %19 = arith.addf %17, %18 : vector<128x128xf32>
    %20 = tpu.transpose %19, [1, 0] : vector<128x128xf32> -> vector<128x128xf32>
    %21 = vector.extract_strided_slice %20 {offsets = [0, 0], sizes = [1, 128], strides = [1, 1]} : vector<128x128xf32> to vector<1x128xf32>
    %cst_12 = arith.constant 5.000000e-01 : f32
    %22 = vector.broadcast %cst_12 : f32 to vector<1x128xf32>
    %23 = arith.mulf %22, %21 : vector<1x128xf32>
    %24 = math.tanh %23 : vector<1x128xf32>
    %cst_13 = arith.constant 1.000000e+00 : f32
    %25 = vector.broadcast %cst_13 : f32 to vector<1x128xf32>
    %26 = arith.addf %24, %25 : vector<1x128xf32>
    %cst_14 = arith.constant 5.000000e-01 : f32
    %27 = vector.broadcast %cst_14 : f32 to vector<1x128xf32>
    %28 = arith.mulf %27, %26 : vector<1x128xf32>
    %c0_15 = arith.constant 0 : index
    %c0_16 = arith.constant 0 : index
    %c0_17 = arith.constant 0 : index
    %29 = vector.load %arg3[%c0_15, %c0_16, %c0_17] : memref<1x1x128xf32, #tpu.memory_space<vmem>>, vector<1x1x128xf32>
    %30 = vector.shape_cast %29 : vector<1x1x128xf32> to vector<1x128xf32>
    %31 = vector.shape_cast %28 : vector<1x128xf32> to vector<1x1x128xf32>
    tpu.vector_store %arg3[%c0_15, %c0_16, %c0_17], %31 {strides = array<i32>} : memref<1x1x128xf32, #tpu.memory_space<vmem>>, vector<1x1x128xf32>,
    return
  }
  func.func @transform_0(%arg0: i32) -> (i32, i32) {
    %c0_i32 = arith.constant 0 : i32
    %c0_i32_0 = arith.constant 0 : i32
    return %arg0, %c0_i32 : i32, i32
  }
  func.func @transform_1(%arg0: i32) -> (i32, i32) {
    %c0_i32 = arith.constant 0 : i32
    %c0_i32_0 = arith.constant 0 : i32
    %c0_i32_1 = arith.constant 0 : i32
    return %c0_i32, %c0_i32_0 : i32, i32
  }
  func.func @transform_2(%arg0: i32) -> (i32, i32, i32) {
    %c0_i32 = arith.constant 0 : i32
    %c0_i32_0 = arith.constant 0 : i32
    %c0_i32_1 = arith.constant 0 : i32
    return %arg0, %c0_i32, %c0_i32_0 : i32, i32, i32
  }
}

</mosaic_0001>

<bundles_post_ra>
// kernel: tpu_custom_call.1
= control target key start
LH: loop header
LB: loop body
LE: loop exit
PB: predicated region body
PF: predicated region fallthrough
CT: control target
= control target key end

     0   :  { %7 = vsyncpa [#allocation3], 0  ;;  %s636_s0 = inlined_call_operand.vmem [shape: f32[128,20], index: 0, kind: input, shape index: {}]   ;;  %s637_s1 = inlined_call_operand.hbm [shape: f32[312,128], index: 1, kind: input, shape index: {}]   ;;  %s638_s2 = inlined_call_operand.hbm [shape: f32[1,1,128], index: 2, kind: output, shape index: {}]  }
   0x1   :  { %8 = vsyncpa [#allocation4], 0  ;;  %s15_s11 = sshll.u32 %s637_s1, 4  ;;  %s529_s12 = smov [#allocation2]   ;;  %s16_s11 = int_to_ptr.hbm [resolvable:$true] %s15_s11 }
   0x2   :  { %s17_s13 = sshll.u32 %s529_s12, 4  ;;  %s530_s14 = smov 128   ;;  %s18_s13 = int_to_ptr.vmem [resolvable:$true] %s17_s13 }
   0x3   :  { %s531_s15 = smov 8  }
   0x4   :  { %23 = dma.hbm_to_vmem [thread:$0]  %s16_s11, 4992, %s18_s13, [#allocation3], %s530_s14, %s530_s14, %s531_s15  }
   0x5   :  { %525 = dma.done.wait [#allocation3], 4992  }
   0x6   :  { %526 = vsyncadd [#allocation3], 4294962304  ;;  %vm98_vm0 = vcmask 1043456   ;;  %v46_v0 = vld [vmem:[#allocation2 + $0x10] sm:$0xf]  ;;  %v45_v1 = vld [vmem:[#allocation2 + $0x8] sm:$0xff] }
   0x7   :  { %419 = vmatpush.msk.msra.mxu0 %vm98_vm0, %v46_v0  ;;  %v44_v2 = vld [vmem:[#allocation2] sm:$0xff]  ;;  %vm49_vm1 = vcmask 162816   ;;  %v29_v4 = vld [vmem:[%s636_s0 + $0x8] sm:$0xff]  ;;  %v30_v5 = vld [vmem:[%s636_s0 + $0x10] sm:$0xff]  ;;  %s409_s21 = sshll.u32 %s638_s2, 4  ;;  %s410_s21 = int_to_ptr.hbm [resolvable:$true] %s409_s21 }
   0x8   :  { %v28_v3 = vld [vmem:[%s636_s0] sm:$0xff]  ;;  %v31_v6 = vld [vmem:[%s636_s0 + $0x18] sm:$0xff]  ;;  %v33_v8 = vld [vmem:[%s636_s0 + $0x28] sm:$0xff] }
   0x9   :  { %116 = vmatpush.msra.mxu0 %v45_v1  ;;  %v32_v7 = vld [vmem:[%s636_s0 + $0x20] sm:$0xff]  ;;  %v34_v9 = vld [vmem:[%s636_s0 + $0x30] sm:$0xff]  ;;  %v35_v10 = vld [vmem:[%s636_s0 + $0x38] sm:$0xff] }
   0xa   :  { %v36_v11 = vld [vmem:[%s636_s0 + $0x40] sm:$0xff]  ;;  %v197_v13 = vld [vmem:[#allocation2 + $0x98] sm:$0xff]  ;;  %v196_v14 = vld [vmem:[#allocation2 + $0x90] sm:$0xff] }
   0xb   :  { %117 = vmatpush.msra.mxu0 %v44_v2  ;;  %v198_v12 = vld [vmem:[#allocation2 + $0xa0] sm:$0xff]  ;;  %v37_v15 = vld [vmem:[%s636_s0 + $0x48] sm:$0xff]  ;;  %v193_v18 = vld [vmem:[#allocation2 + $0x78] sm:$0xff] }
   0xc   :  { %420 = vmatmul.msk.f32.vlgmr.msra.gmra.mxu0 %vm49_vm1, %v28_v3  ;;  %201 = vmatpush.msra.mxu1 %v198_v12  ;;  %v195_v16 = vld [vmem:[#allocation2 + $0x88] sm:$0xff]  ;;  %v194_v17 = vld [vmem:[#allocation2 + $0x80] sm:$0xff]  ;;  %v192_v19 = vld [vmem:[#allocation2 + $0x70] sm:$0xff] }
   0xd   :  { %436 = vmatpush.msra.mxu3 %v198_v12  ;;  %v38_v20 = vld [vmem:[%s636_s0 + $0x50] sm:$0xff]  ;;  %v191_v21 = vld [vmem:[#allocation2 + $0x68] sm:$0xff]  ;;  %v190_v22 = vld [vmem:[#allocation2 + $0x60] sm:$0xff] }
   0xe   :  { %202 = vmatpush.msra.mxu1 %v197_v13  ;;  %v189_v23 = vld [vmem:[#allocation2 + $0x58] sm:$0xff]  ;;  %v188_v24 = vld [vmem:[#allocation2 + $0x50] sm:$0xff]  ;;  %v187_v26 = vld [vmem:[#allocation2 + $0x48] sm:$0xff] }
   0xf   :  { %437 = vmatpush.msra.mxu3 %v197_v13  ;;  %v39_v25 = vld [vmem:[%s636_s0 + $0x58] sm:$0xff]  ;;  %v186_v27 = vld [vmem:[#allocation2 + $0x40] sm:$0xff]  ;;  %v184_v30 = vld [vmem:[#allocation2 + $0x30] sm:$0xff] }
  0x10   :  { %203 = vmatpush.msra.mxu1 %v196_v14  ;;  %v185_v28 = vld [vmem:[#allocation2 + $0x38] sm:$0xff]  ;;  %v40_v29 = vld [vmem:[%s636_s0 + $0x60] sm:$0xff]  ;;  %v183_v31 = vld [vmem:[#allocation2 + $0x28] sm:$0xff] }
  0x11   :  { %438 = vmatpush.msra.mxu3 %v196_v14  ;;  %v41_v32 = vld [vmem:[%s636_s0 + $0x68] sm:$0xff]  ;;  %v42_v33 = vld [vmem:[%s636_s0 + $0x70] sm:$0xff]  ;;  %v43_v34 = vld [vmem:[%s636_s0 + $0x78] sm:$0xff]  ;;  %s532_s0 = smov [#allocation5]  }
  0x12   :  { %204 = vmatpush.msra.mxu1 %v195_v16  ;;  %v615_v35 = vld [vmem:[#allocation2 + $0x20] ss:$0 sm:$0xff]  ;;  %v297_v63 = vld [vmem:[#allocation2 + $0x128] sm:$0xff]  ;;  %v290_v12 = vld [vmem:[#allocation2 + $0xf0] sm:$0xff]  ;;  %s407_s18 = sshll.u32 %s532_s0, 4  ;;  %s408_s18 = int_to_ptr.vmem [resolvable:$true] %s407_s18 }
  0x13   :  { %439 = vmatpush.msra.mxu3 %v195_v16  ;;  %300 = vmatpush.msra.mxu2 %v297_v63  ;;  %v296_v2 = vld [vmem:[#allocation2 + $0x120] sm:$0xff]  ;;  %v289_v13 = vld [vmem:[#allocation2 + $0xe8] sm:$0xff] }
  0x14   :  { %421 = vmatmul.msk.f32.gmra.mxu0 %vm49_vm1, %v29_v4  ;;  %205 = vmatpush.msra.mxu1 %v194_v17  ;;  %v295_v4 = vld [vmem:[#allocation2 + $0x118] sm:$0xff]  ;;  %v288_v16 = vld [vmem:[#allocation2 + $0xe0] sm:$0xff] }
  0x15   :  { %440 = vmatpush.msra.mxu3 %v194_v17  ;;  %301 = vmatpush.msra.mxu2 %v296_v2 }
  0x16   :  { %206 = vmatpush.msra.mxu1 %v193_v18 }
  0x17   :  { %441 = vmatpush.msra.mxu3 %v193_v18  ;;  %302 = vmatpush.msra.mxu2 %v295_v4  ;;  %v287_v18 = vld [vmem:[#allocation2 + $0xd8] sm:$0xff] }
  0x18   :  { %207 = vmatpush.msra.mxu1 %v192_v19 }
  0x19   :  { %442 = vmatpush.msra.mxu3 %v192_v19  ;;  %v286_v19 = vld [vmem:[#allocation2 + $0xd0] sm:$0xff] }
  0x1a   :  { %208 = vmatpush.msra.mxu1 %v191_v21 }
  0x1b   :  { %443 = vmatpush.msra.mxu3 %v191_v21 }
  0x1c   :  { %422 = vmatmul.msk.f32.gmra.mxu0 %vm49_vm1, %v30_v5  ;;  %209 = vmatpush.msra.mxu1 %v190_v22  ;;  %v294_v5 = vld [vmem:[#allocation2 + $0x110] sm:$0xff] }
  0x1d   :  { %444 = vmatpush.msra.mxu3 %v190_v22  ;;  %303 = vmatpush.msra.mxu2 %v294_v5 }
  0x1e   :  { %210 = vmatpush.msra.mxu1 %v189_v23 }
  0x1f   :  { %445 = vmatpush.msra.mxu3 %v189_v23  ;;  %v284_v23 = vld [vmem:[#allocation2 + $0xc0] sm:$0xff] }
  0x20   :  { %211 = vmatpush.msra.mxu1 %v188_v24 }
  0x21   :  { %446 = vmatpush.msra.mxu3 %v188_v24 }
  0x22   :  { %212 = vmatpush.msra.mxu1 %v187_v26 }
  0x23   :  { %447 = vmatpush.msra.mxu3 %v187_v26  ;;  %v282_v26 = vld [vmem:[#allocation2 + $0xb0] sm:$0xff] }
  0x24   :  { %423 = vmatmul.msk.f32.gmra.mxu0 %vm49_vm1, %v31_v6  ;;  %213 = vmatpush.msra.mxu1 %v186_v27  ;;  %v293_v6 = vld [vmem:[#allocation2 + $0x108] sm:$0xff] }
  0x25   :  { %448 = vmatpush.msra.mxu3 %v186_v27  ;;  %304 = vmatpush.msra.mxu2 %v293_v6 }
  0x26   :  { %214 = vmatpush.msra.mxu1 %v185_v28 }
  0x27   :  { %449 = vmatpush.msra.mxu3 %v185_v28 }
  0x28   :  { %215 = vmatpush.msra.mxu1 %v184_v30 }
  0x29   :  { %450 = vmatpush.msra.mxu3 %v184_v30 }
  0x2a   :  { %216 = vmatpush.msra.mxu1 %v183_v31 }
  0x2b   :  { %451 = vmatpush.msra.mxu3 %v183_v31 }
  0x2c   :  { %424 = vmatmul.msk.f32.gmra.mxu0 %vm49_vm1, %v32_v7 }
  0x2d   :  { %452 = vmatpush.msrb.mxu3 %v297_v63 }
  0x2f   :  { %453 = vmatpush.msrb.mxu3 %v296_v2 }
  0x31   :  { %454 = vmatpush.msrb.mxu3 %v295_v4 }
  0x33   :  { %455 = vmatpush.msrb.mxu3 %v294_v5 }
  0x34   :  { %425 = vmatmul.msk.f32.gmra.mxu0 %vm49_vm1, %v33_v8 }
  0x35   :  { %456 = vmatpush.msrb.mxu3 %v293_v6 }
  0x3c   :  { %426 = vmatmul.msk.f32.gmra.mxu0 %vm49_vm1, %v34_v9  ;;  %v292_v9 = vld [vmem:[#allocation2 + $0x100] sm:$0xff] }
  0x3d   :  { %305 = vmatpush.msra.mxu2 %v292_v9  ;;  %457 = vmatpush.msrb.mxu3 %v292_v9 }
  0x44   :  { %427 = vmatmul.msk.f32.gmra.mxu0 %vm49_vm1, %v35_v10 }
  0x4c   :  { %428 = vmatmul.msk.f32.gmra.mxu0 %vm49_vm1, %v36_v11  ;;  %v291_v11 = vld [vmem:[#allocation2 + $0xf8] sm:$0xff] }
  0x4d   :  { %306 = vmatpush.msra.mxu2 %v291_v11  ;;  %458 = vmatpush.msrb.mxu3 %v291_v11 }
  0x4f   :  { %307 = vmatpush.msra.mxu2 %v290_v12  ;;  %459 = vmatpush.msrb.mxu3 %v290_v12 }
  0x51   :  { %308 = vmatpush.msra.mxu2 %v289_v13  ;;  %460 = vmatpush.msrb.mxu3 %v289_v13 }
  0x53   :  { %309 = vmatpush.msra.mxu2 %v288_v16  ;;  %461 = vmatpush.msrb.mxu3 %v288_v16 }
  0x54   :  { %429 = vmatmul.msk.f32.gmra.mxu0 %vm49_vm1, %v37_v15 }
  0x55   :  { %310 = vmatpush.msra.mxu2 %v287_v18  ;;  %462 = vmatpush.msrb.mxu3 %v287_v18 }
  0x57   :  { %311 = vmatpush.msra.mxu2 %v286_v19  ;;  %463 = vmatpush.msrb.mxu3 %v286_v19 }
  0x5c   :  { %430 = vmatmul.msk.f32.gmra.mxu0 %vm49_vm1, %v38_v20  ;;  %v285_v20 = vld [vmem:[#allocation2 + $0xc8] sm:$0xff] }
  0x5d   :  { %312 = vmatpush.msra.mxu2 %v285_v20  ;;  %464 = vmatpush.msrb.mxu3 %v285_v20 }
  0x5f   :  { %313 = vmatpush.msra.mxu2 %v284_v23  ;;  %465 = vmatpush.msrb.mxu3 %v284_v23 }
  0x64   :  { %431 = vmatmul.msk.f32.gmra.mxu0 %vm49_vm1, %v39_v25  ;;  %v283_v25 = vld [vmem:[#allocation2 + $0xb8] sm:$0xff] }
  0x65   :  { %314 = vmatpush.msra.mxu2 %v283_v25  ;;  %466 = vmatpush.msrb.mxu3 %v283_v25 }
  0x67   :  { %315 = vmatpush.msra.mxu2 %v282_v26  ;;  %467 = vmatpush.msrb.mxu3 %v282_v26 }
  0x6c   :  { %432 = vmatmul.msk.f32.gmra.mxu0 %vm49_vm1, %v40_v29 }
  0x74   :  { %433 = vmatmul.msk.f32.gmra.mxu0 %vm49_vm1, %v41_v32 }
  0x7c   :  { %434 = vmatmul.msk.f32.gmra.mxu0 %vm49_vm1, %v42_v33 }
  0x84   :  { %435 = vmatmul.msk.f32.gmra.mxu0 %vm49_vm1, %v43_v34 }
  0x89   :  { %v119_v36 = vpop.f32.mrf.mxu0 }
  0x8a   :  { %v120_v37 = vadd.f32 %v615_v35, %v119_v36 }
  0x8c   :  { %v167_v38 = vmax.f32 %v120_v37, 0.0  ;;  %v473_v37 = vld [vmem:[#allocation2 + $0xa8] ss:$0 sm:$0xff] }
  0x8e   :  { %217 = vmatmul.f32.vlgmr.msra.gmra.mxu1 %v167_v38 }
  0x91   :  { %v122_v39 = vpop.f32.mrf.mxu0 }
  0x92   :  { %v123_v40 = vadd.f32 %v615_v35, %v122_v39 }
  0x94   :  { %v168_v41 = vmax.f32 %v123_v40, 0.0 }
  0x96   :  { %220 = vmatmul.f32.gmra.mxu1 %v168_v41 }
  0x99   :  { %v125_v42 = vpop.f32.mrf.mxu0 }
  0x9a   :  { %v126_v43 = vadd.f32 %v615_v35, %v125_v42 }
  0x9c   :  { %v169_v44 = vmax.f32 %v126_v43, 0.0 }
  0x9e   :  { %223 = vmatmul.f32.gmra.mxu1 %v169_v44 }
  0xa1   :  { %v128_v45 = vpop.f32.mrf.mxu0 }
  0xa2   :  { %v129_v46 = vadd.f32 %v615_v35, %v128_v45 }
  0xa4   :  { %v170_v47 = vmax.f32 %v129_v46, 0.0 }
  0xa6   :  { %226 = vmatmul.f32.gmra.mxu1 %v170_v47 }
  0xa9   :  { %v131_v48 = vpop.f32.mrf.mxu0 }
  0xaa   :  { %v132_v49 = vadd.f32 %v615_v35, %v131_v48 }
  0xac   :  { %v171_v50 = vmax.f32 %v132_v49, 0.0 }
  0xae   :  { %229 = vmatmul.f32.gmra.mxu1 %v171_v50 }
  0xb1   :  { %v134_v51 = vpop.f32.mrf.mxu0 }
  0xb2   :  { %v135_v52 = vadd.f32 %v615_v35, %v134_v51 }
  0xb4   :  { %v172_v53 = vmax.f32 %v135_v52, 0.0 }
  0xb6   :  { %232 = vmatmul.f32.gmra.mxu1 %v172_v53 }
  0xb9   :  { %v137_v54 = vpop.f32.mrf.mxu0 }
  0xba   :  { %v138_v55 = vadd.f32 %v615_v35, %v137_v54 }
  0xbc   :  { %v173_v56 = vmax.f32 %v138_v55, 0.0 }
  0xbe   :  { %235 = vmatmul.f32.gmra.mxu1 %v173_v56 }
  0xc1   :  { %v140_v57 = vpop.f32.mrf.mxu0 }
  0xc2   :  { %v141_v58 = vadd.f32 %v615_v35, %v140_v57 }
  0xc4   :  { %v174_v59 = vmax.f32 %v141_v58, 0.0 }
  0xc6   :  { %238 = vmatmul.f32.gmra.mxu1 %v174_v59 }
  0xc9   :  { %v143_v60 = vpop.f32.mrf.mxu0 }
  0xca   :  { %v144_v61 = vadd.f32 %v615_v35, %v143_v60 }
  0xcc   :  { %v175_v62 = vmax.f32 %v144_v61, 0.0 }
  0xce   :  { %241 = vmatmul.f32.gmra.mxu1 %v175_v62 }
  0xd1   :  { %v146_v0 = vpop.f32.mrf.mxu0 }
  0xd2   :  { %v147_v1 = vadd.f32 %v615_v35, %v146_v0 }
  0xd4   :  { %v176_v3 = vmax.f32 %v147_v1, 0.0 }
  0xd6   :  { %244 = vmatmul.f32.gmra.mxu1 %v176_v3 }
  0xd9   :  { %v149_v7 = vpop.f32.mrf.mxu0 }
  0xda   :  { %v150_v8 = vadd.f32 %v615_v35, %v149_v7 }
  0xdc   :  { %v177_v10 = vmax.f32 %v150_v8, 0.0 }
  0xde   :  { %247 = vmatmul.f32.gmra.mxu1 %v177_v10 }
  0xe1   :  { %v152_v14 = vpop.f32.mrf.mxu0 }
  0xe2   :  { %v153_v15 = vadd.f32 %v615_v35, %v152_v14 }
  0xe4   :  { %v178_v17 = vmax.f32 %v153_v15, 0.0 }
  0xe6   :  { %250 = vmatmul.f32.gmra.mxu1 %v178_v17 }
  0xe9   :  { %v155_v21 = vpop.f32.mrf.mxu0 }
  0xea   :  { %v156_v22 = vadd.f32 %v615_v35, %v155_v21  ;;  %v474_v21 = vld [vmem:[#allocation2 + $0x130] ss:$0 sm:$0xff] }
  0xec   :  { %v179_v24 = vmax.f32 %v156_v22, 0.0 }
  0xee   :  { %253 = vmatmul.f32.vlgmr.msra.gmra.mxu3 %v179_v24 }
  0xf1   :  { %v158_v27 = vpop.f32.mrf.mxu0 }
  0xf2   :  { %v159_v28 = vadd.f32 %v615_v35, %v158_v27 }
  0xf4   :  { %v180_v29 = vmax.f32 %v159_v28, 0.0 }
  0xf6   :  { %256 = vmatmul.f32.gmra.mxu3 %v180_v29 }
  0xf9   :  { %v161_v30 = vpop.f32.mrf.mxu0 }
  0xfa   :  { %v162_v31 = vadd.f32 %v615_v35, %v161_v30 }
  0xfc   :  { %v181_v32 = vmax.f32 %v162_v31, 0.0 }
  0xfe   :  { %259 = vmatmul.f32.gmra.mxu3 %v181_v32 }
 0x101   :  { %v164_v33 = vpop.f32.mrf.mxu0 }
 0x102   :  { %v165_v34 = vadd.f32 %v615_v35, %v164_v33 }
 0x104   :  { %v182_v36 = vmax.f32 %v165_v34, 0.0 }
 0x106   :  { %262 = vmatmul.f32.gmra.mxu3 %v182_v36 }
 0x10b   :  { %v218_v38 = vpop.f32.mrf.mxu1 }
 0x10c   :  { %v219_v39 = vadd.f32 %v473_v37, %v218_v38 }
 0x10e   :  { %v266_v40 = vmax.f32 %v219_v39, 0.0 }
 0x110   :  { %316 = vmatmul.f32.vlgmr.msra.gmra.mxu2 %v266_v40 }
 0x113   :  { %v221_v41 = vpop.f32.mrf.mxu1 }
 0x114   :  { %v222_v42 = vadd.f32 %v473_v37, %v221_v41 }
 0x116   :  { %v267_v43 = vmax.f32 %v222_v42, 0.0 }
 0x118   :  { %319 = vmatmul.f32.gmra.mxu2 %v267_v43 }
 0x11b   :  { %v224_v44 = vpop.f32.mrf.mxu1 }
 0x11c   :  { %v225_v45 = vadd.f32 %v473_v37, %v224_v44 }
 0x11e   :  { %v268_v46 = vmax.f32 %v225_v45, 0.0 }
 0x120   :  { %322 = vmatmul.f32.gmra.mxu2 %v268_v46 }
 0x123   :  { %v227_v47 = vpop.f32.mrf.mxu1 }
 0x124   :  { %v228_v48 = vadd.f32 %v473_v37, %v227_v47 }
 0x126   :  { %v269_v49 = vmax.f32 %v228_v48, 0.0 }
 0x128   :  { %325 = vmatmul.f32.gmra.mxu2 %v269_v49 }
 0x12b   :  { %v230_v35 = vpop.f32.mrf.mxu1 }
 0x12c   :  { %v231_v50 = vadd.f32 %v473_v37, %v230_v35 }
 0x12e   :  { %v270_v51 = vmax.f32 %v231_v50, 0.0 }
 0x130   :  { %328 = vmatmul.f32.gmra.mxu2 %v270_v51 }
 0x133   :  { %v233_v52 = vpop.f32.mrf.mxu1 }
 0x134   :  { %v234_v53 = vadd.f32 %v473_v37, %v233_v52 }
 0x136   :  { %v271_v54 = vmax.f32 %v234_v53, 0.0 }
 0x138   :  { %331 = vmatmul.f32.gmra.mxu2 %v271_v54 }
 0x13b   :  { %v236_v55 = vpop.f32.mrf.mxu1 }
 0x13c   :  { %v237_v56 = vadd.f32 %v473_v37, %v236_v55 }
 0x13e   :  { %v272_v57 = vmax.f32 %v237_v56, 0.0 }
 0x140   :  { %334 = vmatmul.f32.gmra.mxu2 %v272_v57 }
 0x143   :  { %v239_v58 = vpop.f32.mrf.mxu1 }
 0x144   :  { %v240_v59 = vadd.f32 %v473_v37, %v239_v58 }
 0x146   :  { %v273_v60 = vmax.f32 %v240_v59, 0.0 }
 0x148   :  { %337 = vmatmul.f32.gmra.mxu2 %v273_v60 }
 0x14b   :  { %v242_v61 = vpop.f32.mrf.mxu1 }
 0x14c   :  { %v243_v62 = vadd.f32 %v473_v37, %v242_v61 }
 0x14e   :  { %v274_v63 = vmax.f32 %v243_v62, 0.0 }
 0x150   :  { %340 = vmatmul.f32.gmra.mxu2 %v274_v63 }
 0x153   :  { %v245_v0 = vpop.f32.mrf.mxu1 }
 0x154   :  { %v246_v1 = vadd.f32 %v473_v37, %v245_v0 }
 0x156   :  { %v275_v2 = vmax.f32 %v246_v1, 0.0 }
 0x158   :  { %343 = vmatmul.f32.gmra.mxu2 %v275_v2 }
 0x15b   :  { %v248_v3 = vpop.f32.mrf.mxu1 }
 0x15c   :  { %v249_v4 = vadd.f32 %v473_v37, %v248_v3 }
 0x15e   :  { %v276_v5 = vmax.f32 %v249_v4, 0.0 }
 0x160   :  { %346 = vmatmul.f32.gmra.mxu2 %v276_v5 }
 0x163   :  { %v251_v6 = vpop.f32.mrf.mxu1 }
 0x164   :  { %v252_v7 = vadd.f32 %v473_v37, %v251_v6 }
 0x166   :  { %v277_v8 = vmax.f32 %v252_v7, 0.0 }
 0x168   :  { %349 = vmatmul.f32.gmra.mxu2 %v277_v8 }
 0x171   :  { %v254_v9 = vpop.f32.mrf.mxu3 }
 0x172   :  { %v255_v10 = vadd.f32 %v473_v37, %v254_v9 }
 0x174   :  { %v278_v11 = vmax.f32 %v255_v10, 0.0 }
 0x176   :  { %352 = vmatmul.f32.vlgmr.msrb.gmra.mxu3 %v278_v11 }
 0x179   :  { %v257_v12 = vpop.f32.mrf.mxu3 }
 0x17a   :  { %v258_v13 = vadd.f32 %v473_v37, %v257_v12 }
 0x17c   :  { %v279_v14 = vmax.f32 %v258_v13, 0.0 }
 0x17e   :  { %355 = vmatmul.f32.gmra.mxu3 %v279_v14 }
 0x181   :  { %v260_v15 = vpop.f32.mrf.mxu3 }
 0x182   :  { %v261_v16 = vadd.f32 %v473_v37, %v260_v15 }
 0x184   :  { %v280_v17 = vmax.f32 %v261_v16, 0.0 }
 0x186   :  { %358 = vmatmul.f32.gmra.mxu3 %v280_v17 }
 0x189   :  { %v263_v18 = vpop.f32.mrf.mxu3 }
 0x18a   :  { %v264_v19 = vadd.f32 %v473_v37, %v263_v18 }
 0x18c   :  { %v281_v20 = vmax.f32 %v264_v19, 0.0 }
 0x18e   :  { %361 = vmatmul.f32.gmra.mxu3 %v281_v20 }
 0x193   :  { %v317_v22 = vpop.f32.mrf.mxu2 }
 0x194   :  { %v318_v23 = vadd.f32 %v474_v21, %v317_v22 }
 0x196   :  { %365 = vxpose.xlu0.b32.start [1/16] (narrow) %v318_v23, 8 }
 0x19b   :  { %v320_v24 = vpop.f32.mrf.mxu2 }
 0x19c   :  { %v321_v25 = vadd.f32 %v474_v21, %v320_v24 }
 0x19e   :  { %366 = vxpose.xlu0.b32.cont [2/16] (narrow) %v321_v25, 8 }
 0x1a3   :  { %v323_v26 = vpop.f32.mrf.mxu2 }
 0x1a4   :  { %v324_v27 = vadd.f32 %v474_v21, %v323_v26 }
 0x1a6   :  { %367 = vxpose.xlu0.b32.cont [3/16] (narrow) %v324_v27, 8 }
 0x1ab   :  { %v326_v28 = vpop.f32.mrf.mxu2 }
 0x1ac   :  { %v327_v29 = vadd.f32 %v474_v21, %v326_v28 }
 0x1ae   :  { %368 = vxpose.xlu0.b32.cont [4/16] (narrow) %v327_v29, 8 }
 0x1b3   :  { %v329_v30 = vpop.f32.mrf.mxu2 }
 0x1b4   :  { %v330_v31 = vadd.f32 %v474_v21, %v329_v30 }
 0x1b6   :  { %369 = vxpose.xlu0.b32.cont [5/16] (narrow) %v330_v31, 8 }
 0x1bb   :  { %v332_v32 = vpop.f32.mrf.mxu2 }
 0x1bc   :  { %v333_v33 = vadd.f32 %v474_v21, %v332_v32 }
 0x1be   :  { %370 = vxpose.xlu0.b32.cont [6/16] (narrow) %v333_v33, 8 }
 0x1c3   :  { %v335_v34 = vpop.f32.mrf.mxu2 }
 0x1c4   :  { %v336_v36 = vadd.f32 %v474_v21, %v335_v34 }
 0x1c6   :  { %371 = vxpose.xlu0.b32.cont [7/16] (narrow) %v336_v36, 8 }
 0x1cb   :  { %v338_v37 = vpop.f32.mrf.mxu2 }
 0x1cc   :  { %v339_v38 = vadd.f32 %v474_v21, %v338_v37 }
 0x1ce   :  { %372 = vxpose.xlu0.b32.cont [8/16] (narrow) %v339_v38, 8 }
 0x1d3   :  { %v341_v39 = vpop.f32.mrf.mxu2 }
 0x1d4   :  { %v342_v40 = vadd.f32 %v474_v21, %v341_v39 }
 0x1d6   :  { %373 = vxpose.xlu0.b32.cont [9/16] (narrow) %v342_v40, 8 }
 0x1db   :  { %v344_v41 = vpop.f32.mrf.mxu2 }
 0x1dc   :  { %v345_v42 = vadd.f32 %v474_v21, %v344_v41 }
 0x1de   :  { %374 = vxpose.xlu0.b32.cont [10/16] (narrow) %v345_v42, 8 }
 0x1e3   :  { %v347_v43 = vpop.f32.mrf.mxu2 }
 0x1e4   :  { %v348_v44 = vadd.f32 %v474_v21, %v347_v43 }
 0x1e6   :  { %375 = vxpose.xlu0.b32.cont [11/16] (narrow) %v348_v44, 8 }
 0x1eb   :  { %v350_v45 = vpop.f32.mrf.mxu2 }
 0x1ec   :  { %v351_v46 = vadd.f32 %v474_v21, %v350_v45 }
 0x1ee   :  { %376 = vxpose.xlu0.b32.cont [12/16] (narrow) %v351_v46, 8 }
 0x1f9   :  { %v353_v47 = vpop.f32.mrf.mxu3 }
 0x1fa   :  { %v354_v48 = vadd.f32 %v474_v21, %v353_v47 }
 0x1fc   :  { %377 = vxpose.xlu0.b32.cont [13/16] (narrow) %v354_v48, 8 }
 0x201   :  { %v356_v49 = vpop.f32.mrf.mxu3 }
 0x202   :  { %v357_v35 = vadd.f32 %v474_v21, %v356_v49 }
 0x204   :  { %378 = vxpose.xlu0.b32.cont [14/16] (narrow) %v357_v35, 8 }
 0x209   :  { %v359_v50 = vpop.f32.mrf.mxu3 }
 0x20a   :  { %v360_v51 = vadd.f32 %v474_v21, %v359_v50 }
 0x20c   :  { %379 = vxpose.xlu0.b32.cont [15/16] (narrow) %v360_v51, 8 }
 0x211   :  { %v362_v52 = vpop.f32.mrf.mxu3 }
 0x212   :  { %v363_v53 = vadd.f32 %v474_v21, %v362_v52 }
 0x214   :  { %380 = vxpose.xlu0.b32.end [16/16] (narrow) %v363_v53, 8 }
 0x240   :  { %v381_v54 = vpop.trf.xlu0 }
 0x241   :  { %v397_v55 = vmul.f32 0.5, %v381_v54 }
 0x243   :  { %475 = vtanh.f32 %v397_v55 }
 0x249   :  { %v476_v56 = vpop.eup %475 }
 0x24a   :  { %v399_v57 = vadd.f32 1.0, %v476_v56 }
 0x24c   :  { %v400_v58 = vmul.f32 0.5, %v399_v57 }
 0x24e   :  { %401 = vst [vmem:[#allocation5] sm:$0x1] %v400_v58 }
 0x24f   :  { %412 = dma.vmem_to_hbm [thread:$0]  %s408_s18, 16, %s410_s21, [#allocation4]  }
 0x250   :  { %527 = dma.done.wait [#allocation4], 16  }
 0x251   :  { %528 = vsyncadd [#allocation4], 4294967280 }
 0x252   :  { %417 = vsyncpa [#allocation3], 1 }
 0x253   :  { %418 = vsyncpa [#allocation4], 1 }

</bundles_post_ra>
